<compile_context>
chip_gen: v7x
topology: tpu7x:2x2x1
jax: 0.10.0
libtpu: 0.0.40
codegen_flags: <defaults>
</compile_context>

<pallas_src>
import functools

import jax
import jax.numpy as jnp
from jax import lax
from jax.experimental import pallas as pl
from jax.experimental.pallas import tpu as pltpu


def _round_up(x, m):
    return ((x + m - 1) // m) * m


def _vmem_capacity_bytes():
    """Physical VMEM per core; conservative (v7x) fallback if the query fails."""
    try:
        return int(pltpu.get_tpu_info().vmem_capacity_bytes)
    except Exception:
        return 64 * 1024 * 1024


def _attention_kernel(q_ref, k_ref, ctx_ref, score_ref, *, tk_valid, tk_pad,
                      mxu_dtype):
    # q_ref: (TQ, Hp), k_ref: (Tkp, Hp) — batch dim squeezed, plain 2-D tiles.
    q = q_ref[...].astype(mxu_dtype)
    k = k_ref[...].astype(mxu_dtype)
    # scores = q @ k^T (contract feature dim) -> (TQ, Tkp), fp32 accumulation.
    s = lax.dot_general(q, k, (((1,), (1,)), ((), ())),
                        preferred_element_type=jnp.float32)
    if tk_valid != tk_pad:
        # Mask zero-padded key rows so softmax ignores them (static branch).
        col = lax.broadcasted_iota(jnp.int32, s.shape, 1)
        s = jnp.where(col < tk_valid, s, -1e30)
    # Softmax over the key axis, fp32 math.  Exact reciprocal: it only runs on
    # TQx1 values, so approx=True saved nothing and broke row-sum == 1.
    s_max = jnp.max(s, axis=-1, keepdims=True)
    p = jnp.exp(s - s_max)
    denom = jnp.sum(p, axis=-1, keepdims=True)
    att = p * pl.reciprocal(denom, approx=False)
    score_ref[...] = att.astype(score_ref.dtype)
    # context = att @ value, value == key -> (TQ, Hp); bf16 MXU, fp32 accum.
    ctx = jnp.dot(att.astype(mxu_dtype), k, preferred_element_type=jnp.float32)
    ctx_ref[...] = ctx.astype(ctx_ref.dtype)


def attention(query, key, *, score_dtype=None):
    """Pallas equivalent of Attention.forward: returns (context, Attscore)."""
    B, Tq, H = query.shape
    Bk, Tk, Hk = key.shape
    assert Bk == B and Hk == H, "query/key batch and hidden dims must match"

    in_dtype = query.dtype
    score_dtype = in_dtype if score_dtype is None else jnp.dtype(score_dtype)
    q_item = jnp.dtype(in_dtype).itemsize
    k_item = jnp.dtype(key.dtype).itemsize
    score_item = jnp.dtype(score_dtype).itemsize

    # Feed the MXU bf16 when inputs are fp32 (fp32 accumulation preserved).
    mxu_dtype = jnp.bfloat16 if jnp.dtype(in_dtype) == jnp.float32 else in_dtype

    # Lane-dense outputs: pad last dims to multiples of 128.
    Hp = _round_up(H, 128)
    Tkp = _round_up(Tk, 128)

    # Generation-aware VMEM budget (128 MiB on v5e/v6e, 64 MiB on v7x).
    capacity = _vmem_capacity_bytes()
    vmem_budget = (capacity * 3) // 4

    def vmem_estimate(tq):
        return (
            2 * tq * Hp * q_item          # q block (double-buffered input)
            + 2 * tq * Hp * q_item        # ctx block (double-buffered output)
            + 2 * tq * Tkp * score_item   # score block (double-buffered output)
            + 1 * Tkp * Hp * k_item       # key block (resident, single-buffered)
            + 3 * tq * Tkp * 4            # fp32 softmax temporaries (s, p, masked)
            + tq * Tkp * 2                # bf16 att cast for the PV matmul
            + tq * Hp * 4                 # fp32 context accumulator
        )

    tq_cap = min(512, _round_up(Tq, 8))
    feasible = [c for c in (512, 256, 128, 64, 32, 16, 8)
                if c <= tq_cap and vmem_estimate(c) <= vmem_budget]
    if feasible:
        # Prefer the candidate that minimizes Tq over-padding (avoids writing
        # garbage Attscore rows to HBM); tie-break on the larger MXU M dim.
        tq = min(feasible, key=lambda t: (_round_up(Tq, t) - Tq, -t))
    else:
        # TODO(synk): tiled-Tk two-pass fallback for very long contexts on v7x.
        tq = 8
    Tqp = _round_up(Tq, tq)

    est = vmem_estimate(tq)
    vmem_limit = int(min(capacity, max(est + (8 << 20), 32 << 20)))

    # Zero-pad (zeros in H don't change q@k^T; padded key rows are masked in
    # the kernel; padded query rows / output columns are sliced off below).
    if Tqp != Tq or Hp != H:
        q_pad = jnp.pad(query, ((0, 0), (0, Tqp - Tq), (0, Hp - H)))
    else:
        q_pad = query
    if Tkp != Tk or Hp != H:
        k_pad = jnp.pad(key, ((0, 0), (0, Tkp - Tk), (0, Hp - H)))
    else:
        k_pad = key

    grid = (B, Tqp // tq)
    kernel = functools.partial(_attention_kernel, tk_valid=Tk, tk_pad=Tkp,
                               mxu_dtype=mxu_dtype)

    cost = pl.CostEstimate(
        flops=4 * B * Tqp * Tkp * Hp,                 # QK^T + att@V
        transcendentals=B * Tqp * Tkp,                # exp
        bytes_accessed=(B * Tqp * Hp * q_item         # Q read
                        + B * Tkp * Hp * k_item       # K read
                        + B * Tqp * Hp * q_item       # context write
                        + B * Tqp * Tkp * score_item  # score write
                        ),
    )

    q_spec = pl.BlockSpec((None, tq, Hp), lambda b, qi: (b, qi, 0))
    ctx_spec = pl.BlockSpec((None, tq, Hp), lambda b, qi: (b, qi, 0))
    score_spec = pl.BlockSpec((None, tq, Tkp), lambda b, qi: (b, qi, 0))

    def run(key_spec):
        return pl.pallas_call(
            kernel,
            out_shape=(
                jax.ShapeDtypeStruct((B, Tqp, Hp), in_dtype),      # context
                jax.ShapeDtypeStruct((B, Tqp, Tkp), score_dtype),  # Attscore
            ),
            grid=grid,
            in_specs=[q_spec, key_spec],
            out_specs=(ctx_spec, score_spec),
            compiler_params=pltpu.CompilerParams(
                dimension_semantics=("parallel", "parallel"),
                vmem_limit_bytes=vmem_limit,
            ),
            cost_estimate=cost,
        )(q_pad, k_pad)

    try:
        # K is identical across the inner qi axis -> single-buffer it.
        key_spec = pl.BlockSpec((None, Tkp, Hp), lambda b, qi: (b, 0, 0),
                                pipeline_mode=pl.Buffered(1))
        ctx_p, score_p = run(key_spec)
    except Exception:
        # Fallback for builds that reject single-buffering: default pipelining.
        key_spec = pl.BlockSpec((None, Tkp, Hp), lambda b, qi: (b, 0, 0))
        ctx_p, score_p = run(key_spec)

    ctx_out = ctx_p if (Tqp == Tq and Hp == H) else ctx_p[:, :Tq, :H]
    score_out = score_p if (Tqp == Tq and Tkp == Tk) else score_p[:, :Tq, :Tk]
    return ctx_out, score_out


def attention_ref(query, key):
    # pure-JAX reference mirroring the PyTorch forward
    value = key
    scores = jnp.einsum("bqh,bkh->bqk", query, key)
    att = jax.nn.softmax(scores, axis=2)
    ctx = jnp.einsum("bqk,bkh->bqh", att, value)
    return ctx, att


if __name__ == "__main__":
    B, Tq, Tk, H = 2, 8, 8, 32
    k0, k1 = jax.random.split(jax.random.PRNGKey(0))
    query = jax.random.normal(k0, (B, Tq, H), dtype=jnp.float32)
    key = jax.random.normal(k1, (B, Tk, H), dtype=jnp.float32)

    ctx, score = attention(query, key)
    jax.block_until_ready((ctx, score))

    ctx_ref, score_ref = attention_ref(query, key)
    assert ctx.shape == ctx_ref.shape and score.shape == score_ref.shape
    # Tolerance covers bf16 MXU operands (fp32 accumulation); the softmax
    # reciprocal is now exact.
    assert jnp.allclose(ctx, ctx_ref, atol=3e-2, rtol=3e-2)
    assert jnp.allclose(score, score_ref, atol=3e-2, rtol=3e-2)
    print("KERNEL_OK")
</pallas_src>

<mosaic_0001>
module attributes {stable_mosaic.version = 11 : i64} {
  func.func @_attention_kernel(%arg0: i32, %arg1: i32, %arg2: memref<1x8x128xf32, #tpu.memory_space<vmem>>, %arg3: memref<1x128x128xf32, #tpu.memory_space<vmem>>, %arg4: memref<1x8x128xf32, #tpu.memory_space<vmem>>, %arg5: memref<1x8x128xf32, #tpu.memory_space<vmem>>) attributes {dimension_semantics = [#tpu.dimension_semantics<parallel>, #tpu.dimension_semantics<parallel>], iteration_bounds = array<i64: 2, 1>, scalar_prefetch = 0 : i64, scratch_operands = 0 : i64, tpu.core_type = #tpu.core_type<tc>, window_params = [{transform_indices = @transform_0, window_bounds = array<i64: 1, 8, 128>}, {pipeline_mode = #tpu.pipeline_mode<synchronous>, transform_indices = @transform_1, window_bounds = array<i64: 1, 128, 128>}, {transform_indices = @transform_2, window_bounds = array<i64: 1, 8, 128>}, {transform_indices = @transform_3, window_bounds = array<i64: 1, 8, 128>}]} {
    %c0 = arith.constant 0 : index
    %c0_0 = arith.constant 0 : index
    %c0_1 = arith.constant 0 : index
    %0 = vector.load %arg2[%c0, %c0_0, %c0_1] : memref<1x8x128xf32, #tpu.memory_space<vmem>>, vector<1x8x128xf32>
    %1 = vector.shape_cast %0 : vector<1x8x128xf32> to vector<8x128xf32>
    %2 = arith.truncf %1 : vector<8x128xf32> to vector<8x128xbf16>
    %c0_2 = arith.constant 0 : index
    %c0_3 = arith.constant 0 : index
    %c0_4 = arith.constant 0 : index
    %3 = vector.load %arg3[%c0_2, %c0_3, %c0_4] : memref<1x128x128xf32, #tpu.memory_space<vmem>>, vector<1x128x128xf32>
    %4 = vector.shape_cast %3 : vector<1x128x128xf32> to vector<128x128xf32>
    %5 = arith.truncf %4 : vector<128x128xf32> to vector<128x128xbf16>
    %cst = arith.constant dense<0.000000e+00> : vector<8x128xf32>
    %6 = tpu.matmul %2, %5, %cst {dimension_numbers = #tpu.dot_dimension_numbers<[1], [1], [0], [0], [0, 0, 1, 0], [], []>} : vector<8x128xbf16>, vector<128x128xbf16>, vector<8x128xf32> -> vector<8x128xf32>
    %7 = tpu.iota {dimensions = array<i32: 1>} : vector<8x128xi32>
    %c8_i32 = arith.constant 8 : i32
    %8 = vector.broadcast %c8_i32 : i32 to vector<8x128xi32>
    %9 = arith.cmpi slt, %7, %8 : vector<8x128xi32>
    %cst_5 = arith.constant -1.000000e+30 : f32
    %10 = vector.broadcast %cst_5 : f32 to vector<8x128xf32>
    %11 = arith.select %9, %6, %10 : vector<8x128xi1>, vector<8x128xf32>
    %cst_6 = arith.constant dense<0xFF800000> : vector<8xf32>
    %12 = vector.multi_reduction <maximumf>, %11, %cst_6 [1] : vector<8x128xf32> to vector<8xf32>
    %13 = vector.shape_cast %12 : vector<8xf32> to vector<8x1xf32>
    %14 = vector.broadcast %13 : vector<8x1xf32> to vector<8x128xf32>
    %15 = arith.subf %11, %14 : vector<8x128xf32>
    %16 = math.exp %15 : vector<8x128xf32>
    %cst_7 = arith.constant dense<0.000000e+00> : vector<8xf32>
    %17 = vector.multi_reduction <add>, %16, %cst_7 [1] : vector<8x128xf32> to vector<8xf32>
    %18 = vector.shape_cast %17 : vector<8xf32> to vector<8x1xf32>
    %19 = tpu.reciprocal %18 : vector<8x1xf32> -> vector<8x1xf32>
    %20 = vector.broadcast %19 : vector<8x1xf32> to vector<8x128xf32>
    %21 = arith.mulf %16, %20 : vector<8x128xf32>
    %c0_8 = arith.constant 0 : index
    %c0_9 = arith.constant 0 : index
    %c0_10 = arith.constant 0 : index
    %22 = vector.load %arg5[%c0_8, %c0_9, %c0_10] : memref<1x8x128xf32, #tpu.memory_space<vmem>>, vector<1x8x128xf32>
    %23 = vector.shape_cast %22 : vector<1x8x128xf32> to vector<8x128xf32>
    %24 = vector.shape_cast %21 : vector<8x128xf32> to vector<1x8x128xf32>
    tpu.vector_store %arg5[%c0_8, %c0_9, %c0_10], %24 {strides = array<i32>} : memref<1x8x128xf32, #tpu.memory_space<vmem>>, vector<1x8x128xf32>,
    %25 = arith.truncf %21 : vector<8x128xf32> to vector<8x128xbf16>
    %cst_11 = arith.constant dense<0.000000e+00> : vector<8x128xf32>
    %26 = tpu.matmul %25, %5, %cst_11 {dimension_numbers = #tpu.dot_dimension_numbers<[1], [0], [0], [1], [0, 0, 1, 1], [], []>} : vector<8x128xbf16>, vector<128x128xbf16>, vector<8x128xf32> -> vector<8x128xf32>
    %c0_12 = arith.constant 0 : index
    %c0_13 = arith.constant 0 : index
    %c0_14 = arith.constant 0 : index
    %27 = vector.load %arg4[%c0_12, %c0_13, %c0_14] : memref<1x8x128xf32, #tpu.memory_space<vmem>>, vector<1x8x128xf32>
    %28 = vector.shape_cast %27 : vector<1x8x128xf32> to vector<8x128xf32>
    %29 = vector.shape_cast %26 : vector<8x128xf32> to vector<1x8x128xf32>
    tpu.vector_store %arg4[%c0_12, %c0_13, %c0_14], %29 {strides = array<i32>} : memref<1x8x128xf32, #tpu.memory_space<vmem>>, vector<1x8x128xf32>,
    return
  }
  func.func @transform_0(%arg0: i32, %arg1: i32) -> (i32, i32, i32) {
    %c0_i32 = arith.constant 0 : i32
    %c0_i32_0 = arith.constant 0 : i32
    return %arg0, %arg1, %c0_i32 : i32, i32, i32
  }
  func.func @transform_1(%arg0: i32, %arg1: i32) -> (i32, i32, i32) {
    %c0_i32 = arith.constant 0 : i32
    %c0_i32_0 = arith.constant 0 : i32
    %c0_i32_1 = arith.constant 0 : i32
    return %arg0, %c0_i32, %c0_i32_0 : i32, i32, i32
  }
  func.func @transform_2(%arg0: i32, %arg1: i32) -> (i32, i32, i32) {
    %c0_i32 = arith.constant 0 : i32
    %c0_i32_0 = arith.constant 0 : i32
    return %arg0, %arg1, %c0_i32 : i32, i32, i32
  }
  func.func @transform_3(%arg0: i32, %arg1: i32) -> (i32, i32, i32) {
    %c0_i32 = arith.constant 0 : i32
    %c0_i32_0 = arith.constant 0 : i32
    return %arg0, %arg1, %c0_i32 : i32, i32, i32
  }
}

module attributes {stable_mosaic.version = 11 : i64} {
  func.func @_attention_kernel(%arg0: i32, %arg1: i32, %arg2: memref<1x8x128xf32, #tpu.memory_space<vmem>>, %arg3: memref<1x128x128xf32, #tpu.memory_space<vmem>>, %arg4: memref<1x8x128xf32, #tpu.memory_space<vmem>>, %arg5: memref<1x8x128xf32, #tpu.memory_space<vmem>>) attributes {dimension_semantics = [#tpu.dimension_semantics<parallel>, #tpu.dimension_semantics<parallel>], iteration_bounds = array<i64: 2, 1>, scalar_prefetch = 0 : i64, scratch_operands = 0 : i64, tpu.core_type = #tpu.core_type<tc>, window_params = [{transform_indices = @transform_0, window_bounds = array<i64: 1, 8, 128>}, {transform_indices = @transform_1, window_bounds = array<i64: 1, 128, 128>}, {transform_indices = @transform_2, window_bounds = array<i64: 1, 8, 128>}, {transform_indices = @transform_3, window_bounds = array<i64: 1, 8, 128>}]} {
    %c0 = arith.constant 0 : index
    %c0_0 = arith.constant 0 : index
    %c0_1 = arith.constant 0 : index
    %0 = vector.load %arg2[%c0, %c0_0, %c0_1] : memref<1x8x128xf32, #tpu.memory_space<vmem>>, vector<1x8x128xf32>
    %1 = vector.shape_cast %0 : vector<1x8x128xf32> to vector<8x128xf32>
    %2 = arith.truncf %1 : vector<8x128xf32> to vector<8x128xbf16>
    %c0_2 = arith.constant 0 : index
    %c0_3 = arith.constant 0 : index
    %c0_4 = arith.constant 0 : index
    %3 = vector.load %arg3[%c0_2, %c0_3, %c0_4] : memref<1x128x128xf32, #tpu.memory_space<vmem>>, vector<1x128x128xf32>
    %4 = vector.shape_cast %3 : vector<1x128x128xf32> to vector<128x128xf32>
    %5 = arith.truncf %4 : vector<128x128xf32> to vector<128x128xbf16>
    %cst = arith.constant dense<0.000000e+00> : vector<8x128xf32>
    %6 = tpu.matmul %2, %5, %cst {dimension_numbers = #tpu.dot_dimension_numbers<[1], [1], [0], [0], [0, 0, 1, 0], [], []>} : vector<8x128xbf16>, vector<128x128xbf16>, vector<8x128xf32> -> vector<8x128xf32>
    %7 = tpu.iota {dimensions = array<i32: 1>} : vector<8x128xi32>
    %c8_i32 = arith.constant 8 : i32
    %8 = vector.broadcast %c8_i32 : i32 to vector<8x128xi32>
    %9 = arith.cmpi slt, %7, %8 : vector<8x128xi32>
    %cst_5 = arith.constant -1.000000e+30 : f32
    %10 = vector.broadcast %cst_5 : f32 to vector<8x128xf32>
    %11 = arith.select %9, %6, %10 : vector<8x128xi1>, vector<8x128xf32>
    %cst_6 = arith.constant dense<0xFF800000> : vector<8xf32>
    %12 = vector.multi_reduction <maximumf>, %11, %cst_6 [1] : vector<8x128xf32> to vector<8xf32>
    %13 = vector.shape_cast %12 : vector<8xf32> to vector<8x1xf32>
    %14 = vector.broadcast %13 : vector<8x1xf32> to vector<8x128xf32>
    %15 = arith.subf %11, %14 : vector<8x128xf32>
    %16 = math.exp %15 : vector<8x128xf32>
    %cst_7 = arith.constant dense<0.000000e+00> : vector<8xf32>
    %17 = vector.multi_reduction <add>, %16, %cst_7 [1] : vector<8x128xf32> to vector<8xf32>
    %18 = vector.shape_cast %17 : vector<8xf32> to vector<8x1xf32>
    %19 = tpu.reciprocal %18 : vector<8x1xf32> -> vector<8x1xf32>
    %20 = vector.broadcast %19 : vector<8x1xf32> to vector<8x128xf32>
    %21 = arith.mulf %16, %20 : vector<8x128xf32>
    %c0_8 = arith.constant 0 : index
    %c0_9 = arith.constant 0 : index
    %c0_10 = arith.constant 0 : index
    %22 = vector.load %arg5[%c0_8, %c0_9, %c0_10] : memref<1x8x128xf32, #tpu.memory_space<vmem>>, vector<1x8x128xf32>
    %23 = vector.shape_cast %22 : vector<1x8x128xf32> to vector<8x128xf32>
    %24 = vector.shape_cast %21 : vector<8x128xf32> to vector<1x8x128xf32>
    tpu.vector_store %arg5[%c0_8, %c0_9, %c0_10], %24 {strides = array<i32>} : memref<1x8x128xf32, #tpu.memory_space<vmem>>, vector<1x8x128xf32>,
    %25 = arith.truncf %21 : vector<8x128xf32> to vector<8x128xbf16>
    %cst_11 = arith.constant dense<0.000000e+00> : vector<8x128xf32>
    %26 = tpu.matmul %25, %5, %cst_11 {dimension_numbers = #tpu.dot_dimension_numbers<[1], [0], [0], [1], [0, 0, 1, 1], [], []>} : vector<8x128xbf16>, vector<128x128xbf16>, vector<8x128xf32> -> vector<8x128xf32>
    %c0_12 = arith.constant 0 : index
    %c0_13 = arith.constant 0 : index
    %c0_14 = arith.constant 0 : index
    %27 = vector.load %arg4[%c0_12, %c0_13, %c0_14] : memref<1x8x128xf32, #tpu.memory_space<vmem>>, vector<1x8x128xf32>
    %28 = vector.shape_cast %27 : vector<1x8x128xf32> to vector<8x128xf32>
    %29 = vector.shape_cast %26 : vector<8x128xf32> to vector<1x8x128xf32>
    tpu.vector_store %arg4[%c0_12, %c0_13, %c0_14], %29 {strides = array<i32>} : memref<1x8x128xf32, #tpu.memory_space<vmem>>, vector<1x8x128xf32>,
    return
  }
  func.func @transform_0(%arg0: i32, %arg1: i32) -> (i32, i32, i32) {
    %c0_i32 = arith.constant 0 : i32
    %c0_i32_0 = arith.constant 0 : i32
    return %arg0, %arg1, %c0_i32 : i32, i32, i32
  }
  func.func @transform_1(%arg0: i32, %arg1: i32) -> (i32, i32, i32) {
    %c0_i32 = arith.constant 0 : i32
    %c0_i32_0 = arith.constant 0 : i32
    %c0_i32_1 = arith.constant 0 : i32
    return %arg0, %c0_i32, %c0_i32_0 : i32, i32, i32
  }
  func.func @transform_2(%arg0: i32, %arg1: i32) -> (i32, i32, i32) {
    %c0_i32 = arith.constant 0 : i32
    %c0_i32_0 = arith.constant 0 : i32
    return %arg0, %arg1, %c0_i32 : i32, i32, i32
  }
  func.func @transform_3(%arg0: i32, %arg1: i32) -> (i32, i32, i32) {
    %c0_i32 = arith.constant 0 : i32
    %c0_i32_0 = arith.constant 0 : i32
    return %arg0, %arg1, %c0_i32 : i32, i32, i32
  }
}

</mosaic_0001>

<bundles_post_ra>
// kernel: tpu_custom_call.1
= control target key start
LH: loop header
LB: loop body
LE: loop exit
PB: predicated region body
PF: predicated region fallthrough
CT: control target
= control target key end

     0   :  { %9 = vsyncpa [#allocation3], 0  ;;  %s1146_s0 = inlined_call_operand.hbm [shape: f32[2,8,128], index: 0, kind: input, shape index: {}]   ;;  %s1147_s1 = inlined_call_operand.hbm [shape: f32[2,128,128], index: 1, kind: input, shape index: {}]   ;;  %s1148_s2 = inlined_call_operand.hbm [shape: f32[2,8,128], index: 2, kind: output, shape index: {0}]   ;;  %s1149_s3 = inlined_call_operand.hbm [shape: f32[2,8,128], index: 3, kind: output, shape index: {1}]  }
   0x1   :  { %11 = vsyncpa [#allocation3 + $0x1], 0 }
   0x2   :  { %12 = vsyncpa [#allocation6], 0 }
   0x3   :  { %13 = vsyncpa [#allocation4], 0 }
   0x4   :  { %15 = vsyncpa [#allocation4 + $0x1], 0 }
   0x5   :  { %16 = vsyncpa [#allocation9], 0 }
   0x6   :  { %18 = vsyncpa [#allocation9 + $0x1], 0  ;;  %s888_s12 = smov 0   ;;  %s890_s13 = smov 0  }
   0x7   :  { %s892_s14 = smov 0   ;;  %s894_s15 = smov 0  }
   0x8   :  { %s896_s16 = smov 0   ;;  %s898_s17 = smov 0  }
   0x9 LB: > { %s521_s18 = sadd.s32 4294967295, %s858_s17   ;;  %s522_s19 = sadd.s32 4294967294, %s858_s17   ;;  %s858_s17 = sphi %s898_s17, %s24_s17   ;;  %s854_s16 = sphi %s896_s16, %s1168_s16   ;;  %s850_s15 = sphi %s894_s15, %s1167_s15   ;;  %s846_s14 = sphi %s892_s14, %s1166_s14   ;;  %s842_s13 = sphi %s890_s13, %s1165_s13   ;;  %s838_s12 = sphi %s888_s12, %s1164_s12  }
   0xa   : > { %p58_p0 = scmp.ne.s32.totalorder %s842_s13, %s838_s12  ;;  %p59_p1 = scmp.eq.s32.totalorder %s521_s18, 0 }
   0xb   : > { %p116_p2 = scmp.eq.s32.totalorder %s522_s19, 1  ;;  %p523_p3 = scmp.ge.s32.totalorder %s858_s17, 1 }
   0xc   : > { %p925_p4 = por %p59_p1, %p58_p0  ;;  %p151_p5 = scmp.lt.s32.totalorder %s858_s17, 3 }
   0xd   : > { %p930_p6 = por %p116_p2, %p58_p0  ;;  %s539_s22 = sshll.u32 %s850_s15, 11 }
   0xe   : > { %s1153_s20 = scalar_select %p925_p4, 1, 0 }
   0xf   : > { %s1154_s21 = scalar_select %p930_p6, 1, 0 }
  0x10   : > { %p935_p7 = pnand %p523_p3, %p151_p5  ;;  %s942_s26 = scalar_lea.hbm %s1147_s1, %s539_s22 }
  0x11   : > { %s860_s27 = smov [#allocation5]   ;;  %s680_s30 = scalar_lea.hbm %s942_s26, 2048 }
  0x12   : > { %s1155_s23 = scalar_select %p935_p7, 1, 0 }
  0x13   : > { %p606_p8 = pneg %p935_p7  ;;  %s166_s28 = sshll.u32 %s860_s27, 4  ;;  %s946_s28 = int_to_ptr.vmem [resolvable:$true] %s166_s28 }
  0x14   : > { %p681_p11 = scmp.ne.s32.totalorder %s942_s26, %s680_s30  ;;  %s685_s6 = scalar_lea.hbm %s1147_s1, 4096 }
  0x15   : > { %p950_p9 = pnand %p606_p8, %p925_p4  ;;  %p686_p1 = scmp.lt.u32.totalorder %s942_s26, %s1147_s1 }
  0x16   : > { %p687_p2 = scmp.lt.u32.totalorder %s685_s6, %s680_s30  ;;  %p689_p5 = scmp.lt.u32.totalorder %s680_s30, %s942_s26 }
  0x17   : > { %p682_p12 = pneg %p950_p9 }
  0x18   : > { %p688_p3 = por %p687_p2, %p686_p1 }
  0x19   : > { %p683_p13 = pnand %p682_p12, %p681_p11 }
  0x1a   : > { %p690_p8 = por %p689_p5, %p688_p3 }
  0x1b   : > { %p684_p0 = pneg %p683_p13 }
  0x1d   : > { %p691_p10 = pnand %p690_p8, %p684_p0 }
  0x1f   : > { %694 = shalt.err (!%p691_p10)
}
  0x20   : > { %s695_s9 = scalar_lea.vmem %s946_s28, 2048  ;;  %p703_p4 = scmp.lt.s32.totalorder %s946_s28, %s946_s28 }
  0x21   : > { %p696_p11 = scmp.ne.s32.totalorder %s946_s28, %s695_s9  ;;  %p704_p7 = scmp.lt.s32.totalorder %s695_s9, %s695_s9 }
  0x23   : > { %p698_p13 = pnand %p696_p11, %p682_p12  ;;  %p705_p1 = por %p704_p7, %p703_p4 }
  0x25   : > { %p699_p6 = pneg %p698_p13 }
  0x27   : > { %p706_p2 = pnand %p705_p1, %p699_p6 }
  0x29   : > { %709 = shalt.err (!%p706_p2)
}
  0x2a   : > { %s861_s10 = smov 128   ;;  %s862_s11 = smov 8  }
  0x2b   : > { %609 = dma.hbm_to_vmem [thread:$0]  (!%p950_p9), %s942_s26, 2048, %s946_s28, [#allocation6], %s861_s10, %s861_s10, %s862_s11  }
  0x2c   : > { %s36_s19 = sadd.s32 1, %s854_s16  ;;  %s45_s22 = sadd.s32 1, %s846_s14 }
  0x2d   : > { %p38_p4 = scmp.ge.s32.totalorder %s36_s19, 2  ;;  %p52_p6 = scmp.ne.s32.totalorder %s846_s14, %s842_s13 }
  0x2e   : > { %p53_p7 = scmp.eq.s32.totalorder %s858_s17, 0  ;;  %p110_p12 = scmp.eq.s32.totalorder %s521_s18, 1 }
  0x2f   : > { %s1170_s19 = smov (%p38_p4, %s36_s19), 0  ;;  %p621_p0 = scmp.lt.s32.totalorder %s858_s17, 2 }
  0x30   : > { %p988_p10 = por %p53_p7, %p52_p6  ;;  %s40_s25 = ssub.s32 %s854_s16, %s1170_s19 }
  0x31   : > { %p43_p3 = scmp.eq.s32.totalorder %s40_s25, 0  ;;  %p997_p5 = por %p110_p12, %p52_p6 }
  0x32   : > { %s180_s27 = sand.u32 1, %s846_s14   ;;  %s528_s28 = sshll.u32 %s854_s16, 7 }
  0x33   : > { %s1004_s29 = scalar_select %p43_p3, %s846_s14, %s45_s22  }
  0x34   : > { %s527_s30 = sshll.u32 %s180_s27, 3  ;;  %s1009_s6 = scalar_lea.hbm %s1146_s0, %s528_s28 }
  0x35   : > { %s184_s18 = scalar_lea.vmem [#allocation2], %s527_s30  ;;  %p1013_p9 = pnand %p621_p0, %p988_p10 }
  0x36   : > { %s192_s7 = sshll.u32 %s184_s18, 4  ;;  %s181_s9 = scalar_lea.sflag [#allocation3], %s180_s27  ;;  %s1017_s7 = int_to_ptr.vmem [resolvable:$true] %s192_s7 }
  0x37   : > { %s710_s10 = scalar_lea.hbm %s1009_s6, 128  ;;  %p712_p11 = pneg %p1013_p9 }
  0x38   : > { %p711_p8 = scmp.ne.s32.totalorder %s1009_s6, %s710_s10  ;;  %s715_s24 = scalar_lea.hbm %s1146_s0, 256 }
  0x39   : > { %p716_p2 = scmp.lt.u32.totalorder %s1009_s6, %s1146_s0  ;;  %p717_p4 = scmp.lt.u32.totalorder %s715_s24, %s710_s10 }
  0x3a   : > { %p713_p13 = pnand %p712_p11, %p711_p8  ;;  %p719_p7 = scmp.lt.u32.totalorder %s710_s10, %s1009_s6 }
  0x3b   : > { %p718_p6 = por %p717_p4, %p716_p2 }
  0x3c   : > { %p714_p1 = pneg %p713_p13 }
  0x3d   : > { %p720_p10 = por %p719_p7, %p718_p6 }
  0x3f   : > { %p721_p12 = pnand %p720_p10, %p714_p1 }
  0x41   : > { %724 = shalt.err (!%p721_p12)
}
  0x42   : > { %s725_s27 = scalar_lea.vmem %s1017_s7, 128  ;;  %s863_s30 = smov [#allocation2]  }
  0x43   : > { %p726_p0 = scmp.ne.s32.totalorder %s1017_s7, %s725_s27  ;;  %s730_s4 = sshll.u32 %s863_s30, 4  ;;  %s731_s4 = int_to_ptr.vmem [resolvable:$false] %s730_s4 }
  0x44   : > { %s732_s5 = scalar_lea.vmem %s731_s4, 256  ;;  %p733_p13 = scmp.lt.s32.totalorder %s1017_s7, %s731_s4 }
  0x45   : > { %p728_p3 = pnand %p726_p0, %p712_p11  ;;  %p734_p2 = scmp.lt.s32.totalorder %s732_s5, %s725_s27 }
  0x47   : > { %p729_p8 = pneg %p728_p3  ;;  %p735_p4 = por %p734_p2, %p733_p13 }
  0x49   : > { %p736_p6 = pnand %p735_p4, %p729_p8 }
  0x4b   : > { %739 = shalt.err (!%p736_p6)
}
  0x4c   : > { %613 = dma.hbm_to_vmem [thread:$0]  (!%p1013_p9), %s1009_s6, 128, %s1017_s7, %s181_s9  }
  0x4d   : > { %p1160_p1 = scmp.ne.s32.totalorder %s1155_s23, 0 }
  0x4e   : > { %s1047_s18 = sand.u32 (!%p1160_p1), 1, %s842_s13   ;;  %p1161_p11 = scmp.ne.s32.totalorder (!%p1160_p1), %s1153_s20, 0 }
  0x4f   : > { %201 = sbr.rel (%p1160_p1) target bundleno = 909 (0x38d), region = 28  ;;  %s1050_s10 = sshll.u32 (!%p1160_p1), %s1047_s18, 3 }
  0x50   : > { %s204_s11 = scalar_lea.sflag (!%p1160_p1), [#allocation3], %s1047_s18  ;;  %s207_s22 = scalar_lea.vmem (!%p1160_p1), [#allocation2], %s1050_s10 }
  0x56   : > { %821 = dma.done.wait (%p1161_p11), %s204_s11, 128  }
  0x57   : > { %823 = vsyncadd (%p1161_p11), %s204_s11, 4294967168 }
  0x58   : > { %825 = dma.done.wait (%p1161_p11), [#allocation6], 2048  }
  0x59   : > { %827 = vsyncadd (%p1161_p11), [#allocation6], 4294965248  ;;  %v864_v0 = vmov 0.0   ;;  %vm865_vm0 = vmmov 0   ;;  %v242_v1 = vld [vmem:[#allocation5] sm:$0xff]  ;;  %v243_v2 = vld [vmem:[#allocation5 + $0x8] sm:$0xff]  ;;  %v306_v27 = vlaneseq }
  0x5a   : > { %558 = vmatprep.subr.bf16.mxu0 %v864_v0  ;;  %574 = vmatprep.mubr.msk.bf16.mxu0 %vm865_vm0, %v864_v0  ;;  %v258_v3 = vpack.c.bf16 %v243_v2, %v242_v1  ;;  %v244_v4 = vld [vmem:[#allocation5 + $0x10] sm:$0xff]  ;;  %v245_v5 = vld [vmem:[#allocation5 + $0x18] sm:$0xff]  ;;  %v246_v7 = vld [vmem:[#allocation5 + $0x20] sm:$0xff]  ;;  %s238_s20 = scalar_lea.vmem [#allocation8], %s1050_s10  ;;  %s535_s23 = sshll.u32 %s850_s15, 7 }
  0x5b   : > { %578 = vmatprep.subr.bf16.mxu1 %v864_v0  ;;  %594 = vmatprep.mubr.msk.bf16.mxu1 %vm865_vm0, %v864_v0  ;;  %v259_v6 = vpack.c.bf16 %v245_v5, %v244_v4  ;;  %v247_v8 = vld [vmem:[#allocation5 + $0x28] sm:$0xff]  ;;  %v248_v10 = vld [vmem:[#allocation5 + $0x30] sm:$0xff]  ;;  %v249_v11 = vld [vmem:[#allocation5 + $0x38] sm:$0xff]  ;;  %v307_v28 = vand.u32 127, %v306_v27  ;;  %s1071_s8 = scalar_lea.hbm %s1149_s3, %s535_s23  ;;  %s396_s9 = sshll.u32 %s238_s20, 4  ;;  %s397_s9 = int_to_ptr.vmem [resolvable:$true] %s396_s9 }
  0x5c   : > { %559 = vmatpush3.bf16.xpose.msra.mxu0 %v258_v3  ;;  %579 = vmatpush3.bf16.msra.mxu1 %v258_v3  ;;  %v260_v9 = vpack.c.bf16 %v247_v8, %v246_v7  ;;  %v261_v12 = vpack.c.bf16 %v249_v11, %v248_v10  ;;  %v250_v13 = vld [vmem:[#allocation5 + $0x40] sm:$0xff]  ;;  %v251_v14 = vld [vmem:[#allocation5 + $0x48] sm:$0xff]  ;;  %v252_v16 = vld [vmem:[#allocation5 + $0x50] sm:$0xff]  ;;  %s368_s24 = scalar_lea.sflag [#allocation9], %s1047_s18  ;;  %s740_s25 = scalar_lea.vmem %s397_s9, 128 }
  0x5d   : > { %560 = vmatprep.subr.bf16.mxu0 %v864_v0  ;;  %580 = vmatprep.subr.bf16.mxu1 %v864_v0  ;;  %v262_v15 = vpack.c.bf16 %v251_v14, %v250_v13  ;;  %v253_v17 = vld [vmem:[#allocation5 + $0x58] sm:$0xff]  ;;  %v254_v19 = vld [vmem:[#allocation5 + $0x60] sm:$0xff]  ;;  %v255_v20 = vld [vmem:[#allocation5 + $0x68] sm:$0xff]  ;;  %vm308_vm1 = vcmp.lt.s32.totalorder %v307_v28, 8  ;;  %p741_p9 = scmp.ne.s32.totalorder %s397_s9, %s740_s25  ;;  %s866_s28 = smov [#allocation8]  }
  0x5e   : > { %v263_v18 = vpack.c.bf16 %v253_v17, %v252_v16  ;;  %v264_v21 = vpack.c.bf16 %v255_v20, %v254_v19  ;;  %v256_v22 = vld [vmem:[#allocation5 + $0x70] sm:$0xff]  ;;  %v257_v23 = vld [vmem:[#allocation5 + $0x78] sm:$0xff]  ;;  %s744_s27 = sshll.u32 %s866_s28, 4  ;;  %s745_s27 = int_to_ptr.vmem [resolvable:$false] %s744_s27 }
  0x5f   : > { %v265_v24 = vpack.c.bf16 %v257_v23, %v256_v22  ;;  %v240_v25 = vld [vmem:[%s207_s22] sm:$0xff]  ;;  %p742_p7 = pnand %p741_p9, %p997_p5  ;;  %s746_s30 = scalar_lea.vmem %s745_s27, 256 }
  0x60   : > { %581 = vmatpush3.bf16.msra.mxu1 %v259_v6  ;;  %v241_v26 = vpack.c.bf16 %v240_v25, %v240_v25  ;;  %p747_p12 = scmp.lt.s32.totalorder %s397_s9, %s745_s27  ;;  %p748_p0 = scmp.lt.s32.totalorder %s746_s30, %s740_s25 }
  0x61   : > { %582 = vmatprep.subr.bf16.mxu1 %v864_v0  ;;  %p743_p10 = pneg %p742_p7 }
  0x62   : > { %p749_p3 = por %p748_p0, %p747_p12 }
  0x64   : > { %561 = vmatpush3.bf16.xpose.msra.mxu0 %v259_v6  ;;  %583 = vmatpush3.bf16.msra.mxu1 %v260_v9  ;;  %p750_p8 = pnand %p749_p3, %p743_p10 }
  0x65   : > { %562 = vmatprep.subr.bf16.mxu0 %v864_v0  ;;  %584 = vmatprep.subr.bf16.mxu1 %v864_v0 }
  0x68   : > { %585 = vmatpush3.bf16.msra.mxu1 %v261_v12 }
  0x69   : > { %586 = vmatprep.subr.bf16.mxu1 %v864_v0 }
  0x6c   : > { %563 = vmatpush3.bf16.xpose.msra.mxu0 %v260_v9  ;;  %587 = vmatpush3.bf16.msra.mxu1 %v262_v15 }
  0x6d   : > { %564 = vmatprep.subr.bf16.mxu0 %v864_v0  ;;  %588 = vmatprep.subr.bf16.mxu1 %v864_v0 }
  0x70   : > { %589 = vmatpush3.bf16.msra.mxu1 %v263_v18 }
  0x71   : > { %590 = vmatprep.subr.bf16.mxu1 %v864_v0 }
  0x74   : > { %565 = vmatpush3.bf16.xpose.msra.mxu0 %v261_v12  ;;  %591 = vmatpush3.bf16.msra.mxu1 %v264_v21 }
  0x75   : > { %566 = vmatprep.subr.bf16.mxu0 %v864_v0  ;;  %592 = vmatprep.subr.bf16.mxu1 %v864_v0 }
  0x78   : > { %593 = vmatpush3.bf16.msra.mxu1 %v265_v24 }
  0x7c   : > { %567 = vmatpush3.bf16.xpose.msra.mxu0 %v262_v15 }
  0x7d   : > { %568 = vmatprep.subr.bf16.mxu0 %v864_v0 }
  0x84   : > { %569 = vmatpush3.bf16.xpose.msra.mxu0 %v263_v18 }
  0x85   : > { %570 = vmatprep.subr.bf16.mxu0 %v864_v0 }
  0x8c   : > { %571 = vmatpush3.bf16.xpose.msra.mxu0 %v264_v21 }
  0x8d   : > { %572 = vmatprep.subr.bf16.mxu0 %v864_v0 }
  0x94   : > { %573 = vmatpush3.bf16.xpose.msra.mxu0 %v265_v24 }
  0x9b   : > { %575 = vmatmul.mubr.bf16.vlgmr.msra.gmra.mrb[0].mxu0 %v241_v26 }
 0x16e   : > { %v300_v29 = vpop.f32.mrb[0].mxu0 }
 0x16f   : > { %v576_v30 = vpop.f32.mrb[1].mxu0  ;;  %v309_v31 = vsel %vm308_vm1, %v300_v29, -1e+30 }
 0x170   : > { %310 = vmax.xlane.f32.xlu0 %v309_v31  ;;  %v303_v32 = vpop.f32.mrb[2].mxu0 }
 0x171   : > { %v577_v33 = vpop.f32.mrb[3].mxu0 }
 0x1fd   : > { %v311_v34 = vpop.xlane.xlu0 %310 }
 0x1fe   : > { %v312_v35 = vsub.f32 %v309_v31, %v311_v34 }
 0x200   : > { %v313_v36 = vmul.f32 1.442695, %v312_v35 }
 0x202   : > { %676 = vpow2.f32 %v313_v36 }
 0x20c   : > { %v677_v37 = vpop.eup %676 }
 0x20d   : > { %315 = vadd.xlane.f32.xlu0 %v677_v37 }
 0x29a   : > { %v316_v38 = vpop.xlane.xlu0 %315 }
 0x29b   : > { %678 = vrcp.f32 %v316_v38 }
 0x2a5   : > { %v679_v39 = vpop.eup %678 }
 0x2a6   : > { %v318_v40 = vmul.f32 %v679_v39, %v677_v37 }
 0x2a8   : > { %v320_v41 = vpack.c.bf16 %v318_v40, %v318_v40  ;;  %319 = vst [vmem:[%s238_s20] sm:$0xff] %v318_v40 }
 0x2aa   : > { %595 = vmatmul.mubr.bf16.vlgmr.msra.gmra.mrb[0].mxu1 %v320_v41 }
 0x2ab   : > { %753 = shalt.err (!%p750_p8)
}
 0x2ac   : > { %s754_s4 = scalar_lea.hbm %s1071_s8, 128  ;;  %s758_s22 = scalar_lea.hbm %s1149_s3, 256 }
 0x2ad   : > { %p755_p13 = scmp.ne.s32.totalorder %s1071_s8, %s754_s4  ;;  %p759_p6 = scmp.lt.u32.totalorder %s1071_s8, %s1149_s3 }
 0x2ae   : > { %p760_p1 = scmp.lt.u32.totalorder %s758_s22, %s754_s4  ;;  %p762_p9 = scmp.lt.u32.totalorder %s754_s4, %s1071_s8 }
 0x2af   : > { %p756_p2 = pnand %p755_p13, %p997_p5 }
 0x2b0   : > { %p761_p11 = por %p760_p1, %p759_p6 }
 0x2b1   : > { %p757_p4 = pneg %p756_p2 }
 0x2b2   : > { %p763_p7 = por %p762_p9, %p761_p11 }
 0x2b4   : > { %p764_p10 = pnand %p763_p7, %p757_p4 }
 0x2b6   : > { %767 = shalt.err (!%p764_p10)
}
 0x2b7   : > { %603 = dma.vmem_to_hbm [thread:$0]  (%p997_p5), %s397_s9, 128, %s1071_s8, %s368_s24  }
 0x2b8   : > { %s231_s7 = scalar_lea.vmem [#allocation7], %s1050_s10  ;;  %s1099_s30 = scalar_lea.hbm %s1148_s2, %s535_s23 }
 0x2b9   : > { %s382_s25 = sshll.u32 %s231_s7, 4  ;;  %s363_s4 = scalar_lea.sflag [#allocation4], %s1047_s18  ;;  %s1092_s25 = int_to_ptr.vmem [resolvable:$true] %s382_s25 }
 0x2ba   : > { %s768_s5 = scalar_lea.vmem %s1092_s25, 128  ;;  %s867_s10 = smov [#allocation7]  }
 0x2bb   : > { %p769_p12 = scmp.ne.s32.totalorder %s1092_s25, %s768_s5  ;;  %s772_s15 = sshll.u32 %s867_s10, 4  ;;  %s773_s15 = int_to_ptr.vmem [resolvable:$false] %s772_s15 }
 0x2bc   : > { %s774_s8 = scalar_lea.vmem %s773_s15, 256  ;;  %p775_p8 = scmp.lt.s32.totalorder %s1092_s25, %s773_s15 }
 0x2bd   : > { %p770_p0 = pnand %p769_p12, %p997_p5  ;;  %p776_p13 = scmp.lt.s32.totalorder %s774_s8, %s768_s5 }
 0x2bf   : > { %p771_p3 = pneg %p770_p0  ;;  %p777_p2 = por %p776_p13, %p775_p8 }
 0x2c1   : > { %p778_p4 = pnand %p777_p2, %p771_p3 }
 0x37d   : > { %v355_v42 = vpop.f32.mrb[0].mxu1 }
 0x37e   : > { %361 = vst [vmem:[%s231_s7] sm:$0xff] %v355_v42  ;;  %v596_v43 = vpop.f32.mrb[1].mxu1 }
 0x37f   : > { %v358_v44 = vpop.f32.mrb[2].mxu1 }
 0x380   : > { %781 = shalt.err (!%p778_p4)
}
 0x381   : > { %s782_s18 = scalar_lea.hbm %s1099_s30, 128  ;;  %s786_s24 = scalar_lea.hbm %s1148_s2, 256 }
 0x382   : > { %p783_p6 = scmp.ne.s32.totalorder %s1099_s30, %s782_s18  ;;  %p787_p9 = scmp.lt.u32.totalorder %s1099_s30, %s1148_s2 }
 0x383   : > { %p788_p7 = scmp.lt.u32.totalorder %s786_s24, %s782_s18  ;;  %p790_p12 = scmp.lt.u32.totalorder %s782_s18, %s1099_s30 }
 0x384   : > { %p784_p1 = pnand %p783_p6, %p997_p5 }
 0x385   : > { %p789_p10 = por %p788_p7, %p787_p9 }
 0x386   : > { %p785_p11 = pneg %p784_p1 }
 0x387   : > { %p791_p0 = por %p790_p12, %p789_p10 }
 0x389   : > { %p792_p3 = pnand %p791_p0, %p785_p11 }
 0x38b   : > { %795 = shalt.err (!%p792_p3)
}
 0x38c   : > { %602 = dma.vmem_to_hbm [thread:$0]  (%p997_p5), %s1092_s25, 128, %s1099_s30, %s363_s4   ;;  %v597_v45 = vpop.f32.mrb[3].mxu1 }
 0x38d PF: > { %s408_s20 = sand.u32 1, %s838_s12   ;;  %p1162_p8 = scmp.ne.s32.totalorder %s1154_s21, 0 }
 0x38e   : > { %p1163_p13 = scmp.ge.s32.totalorder %s858_s17, 2  ;;  %s409_s6 = scalar_lea.sflag [#allocation4], %s408_s20 }
 0x390   : > { %p615_p2 = pnand %p1163_p13, %p1162_p8 }
 0x392   : > { %829 = dma.done.wait (!%p615_p2), %s409_s6, 128  }
 0x393   : > { %831 = vsyncadd (!%p615_p2), %s409_s6, 4294967168  ;;  %s418_s7 = scalar_lea.sflag [#allocation9], %s408_s20 }
 0x394   : > { %833 = dma.done.wait (!%p615_p2), %s418_s7, 128  }
 0x395   : > { %835 = vsyncadd (!%p615_p2), %s418_s7, 4294967168  ;;  %s24_s17 = sadd.s32 1, %s858_s17   ;;  %s1164_s12 = smov %s842_s13 }
 0x396   : > { %p21_p4 = scmp.ge.s32.totalorder %s24_s17, 4   ;;  %s1165_s13 = smov %s846_s14 }
 0x397   : > { %s1166_s14 = smov %s1004_s29  ;;  %s1167_s15 = smov %s854_s16 }
 0x398   : > { %s1168_s16 = smov %s1170_s19  ;;  %23 = sbr.rel (!%p21_p4) target bundleno = 9 (0x9), region = 95 }
 0x39f   :  { %423 = vsyncpa [#allocation3], 1 }
 0x3a0   :  { %425 = vsyncpa [#allocation3 + $0x1], 1 }
 0x3a1   :  { %426 = vsyncpa [#allocation6], 1 }
 0x3a2   :  { %427 = vsyncpa [#allocation4], 1 }
 0x3a3   :  { %429 = vsyncpa [#allocation4 + $0x1], 1 }
 0x3a4   :  { %430 = vsyncpa [#allocation9], 1 }
 0x3a5   :  { %432 = vsyncpa [#allocation9 + $0x1], 1 }

// kernel: tpu_custom_call.1
= control target key start
LH: loop header
LB: loop body
LE: loop exit
PB: predicated region body
PF: predicated region fallthrough
CT: control target
= control target key end

     0   :  { %9 = vsyncpa [#allocation3], 0  ;;  %s1191_s0 = inlined_call_operand.hbm [shape: f32[2,8,128], index: 0, kind: input, shape index: {}]   ;;  %s1192_s1 = inlined_call_operand.hbm [shape: f32[2,128,128], index: 1, kind: input, shape index: {}]   ;;  %s1193_s2 = inlined_call_operand.hbm [shape: f32[2,8,128], index: 2, kind: output, shape index: {0}]   ;;  %s1194_s3 = inlined_call_operand.hbm [shape: f32[2,8,128], index: 3, kind: output, shape index: {1}]  }
   0x1   :  { %11 = vsyncpa [#allocation3 + $0x1], 0 }
   0x2   :  { %12 = vsyncpa [#allocation6], 0 }
   0x3   :  { %14 = vsyncpa [#allocation6 + $0x1], 0 }
   0x4   :  { %15 = vsyncpa [#allocation4], 0 }
   0x5   :  { %17 = vsyncpa [#allocation4 + $0x1], 0 }
   0x6   :  { %18 = vsyncpa [#allocation9], 0 }
   0x7   :  { %20 = vsyncpa [#allocation9 + $0x1], 0  ;;  %s916_s12 = smov 0   ;;  %s918_s13 = smov 0  }
   0x8   :  { %s920_s14 = smov 0   ;;  %s922_s15 = smov 0  }
   0x9   :  { %s924_s16 = smov 0   ;;  %s926_s17 = smov 0  }
   0xa LB: > { %s549_s18 = sadd.s32 4294967295, %s886_s17   ;;  %s550_s19 = sadd.s32 4294967294, %s886_s17   ;;  %s886_s17 = sphi %s926_s17, %s26_s17   ;;  %s882_s16 = sphi %s924_s16, %s1213_s16   ;;  %s878_s15 = sphi %s922_s15, %s1212_s15   ;;  %s874_s14 = sphi %s920_s14, %s1211_s14   ;;  %s870_s13 = sphi %s918_s13, %s1210_s13   ;;  %s866_s12 = sphi %s916_s12, %s1209_s12  }
   0xb   : > { %s38_s20 = sadd.s32 1, %s882_s16  ;;  %s47_s21 = sadd.s32 1, %s874_s14 }
   0xc   : > { %p40_p0 = scmp.ge.s32.totalorder %s38_s20, 2  ;;  %p54_p1 = scmp.ne.s32.totalorder %s874_s14, %s870_s13 }
   0xd   : > { %p55_p2 = scmp.eq.s32.totalorder %s886_s17, 0  ;;  %p60_p3 = scmp.ne.s32.totalorder %s870_s13, %s866_s12 }
   0xe   : > { %s1215_s20 = smov (%p40_p0, %s38_s20), 0  ;;  %p61_p5 = scmp.eq.s32.totalorder %s549_s18, 0 }
   0xf   : > { %p957_p4 = por %p55_p2, %p54_p1  ;;  %s42_s23 = ssub.s32 %s882_s16, %s1215_s20 }
  0x10   : > { %p112_p6 = scmp.eq.s32.totalorder %s549_s18, 1  ;;  %p45_p7 = scmp.eq.s32.totalorder %s42_s23, 0 }
  0x11   : > { %p963_p8 = por %p61_p5, %p60_p3  ;;  %p118_p10 = scmp.eq.s32.totalorder %s550_s19, 1 }
  0x12   : > { %p967_p9 = por %p112_p6, %p54_p1  ;;  %p650_p13 = scmp.lt.s32.totalorder %s886_s17, 2 }
  0x13   : > { %s1198_s24 = scalar_select %p963_p8, 1, 0 }
  0x14   : > { %s1199_s25 = scalar_select %p967_p9, 1, 0 }
  0x15   : > { %s972_s26 = scalar_select %p45_p7, %s874_s14, %s47_s21  }
  0x16   : > { %p974_p11 = por %p118_p10, %p60_p3  ;;  %s981_s28 = sand.u32 1, %s874_s14  }
  0x17   : > { %s553_s29 = sshll.u32 %s981_s28, 3  ;;  %s554_s30 = sshll.u32 %s882_s16, 7 }
  0x18   : > { %s1200_s27 = scalar_select %p974_p11, 1, 0 }
  0x19   : > { %s988_s6 = scalar_lea.hbm %s1191_s0, %s554_s30  ;;  %s170_s7 = scalar_lea.vmem [#allocation2], %s553_s29 }
  0x1a   : > { %s178_s8 = sshll.u32 %s170_s7, 4  ;;  %p994_p0 = pnand %p650_p13, %p957_p4  ;;  %s990_s8 = int_to_ptr.vmem [resolvable:$true] %s178_s8 }
  0x1b   : > { %s167_s10 = scalar_lea.sflag [#allocation3], %s981_s28  ;;  %s708_s11 = scalar_lea.hbm %s988_s6, 128 }
  0x1c   : > { %p709_p3 = scmp.ne.s32.totalorder %s988_s6, %s708_s11  ;;  %p710_p5 = pneg %p994_p0 }
  0x1d   : > { %s713_s21 = scalar_lea.hbm %s1191_s0, 256  ;;  %p714_p4 = scmp.lt.u32.totalorder %s988_s6, %s1191_s0 }
  0x1e   : > { %p711_p6 = pnand %p710_p5, %p709_p3  ;;  %p715_p10 = scmp.lt.u32.totalorder %s713_s21, %s708_s11 }
  0x1f   : > { %p717_p12 = scmp.lt.u32.totalorder %s708_s11, %s988_s6 }
  0x20   : > { %p712_p7 = pneg %p711_p6  ;;  %p716_p13 = por %p715_p10, %p714_p4 }
  0x22   : > { %p718_p1 = por %p717_p12, %p716_p13 }
  0x24   : > { %p719_p2 = pnand %p718_p1, %p712_p7 }
  0x26   : > { %722 = shalt.err (!%p719_p2)
}
  0x27   : > { %s723_s29 = scalar_lea.vmem %s990_s8, 128  ;;  %s888_s30 = smov [#allocation2]  }
  0x28   : > { %p724_p3 = scmp.ne.s32.totalorder %s990_s8, %s723_s29  ;;  %s728_s4 = sshll.u32 %s888_s30, 4  ;;  %s729_s4 = int_to_ptr.vmem [resolvable:$false] %s728_s4 }
  0x29   : > { %s730_s5 = scalar_lea.vmem %s729_s4, 256  ;;  %p731_p9 = scmp.lt.s32.totalorder %s990_s8, %s729_s4 }
  0x2a   : > { %p726_p6 = pnand %p724_p3, %p710_p5  ;;  %p732_p4 = scmp.lt.s32.totalorder %s730_s5, %s723_s29 }
  0x2c   : > { %p727_p11 = pneg %p726_p6  ;;  %p733_p10 = por %p732_p4, %p731_p9 }
  0x2e   : > { %p734_p12 = pnand %p733_p10, %p727_p11 }
  0x30   : > { %737 = shalt.err (!%p734_p12)
}
  0x31   : > { %639 = dma.hbm_to_vmem [thread:$0]  (!%p994_p0), %s988_s6, 128, %s990_s8, %s167_s10  }
  0x32   : > { %p1202_p1 = scmp.lt.s32.totalorder %s886_s17, 3  ;;  %p1203_p2 = scmp.ge.s32.totalorder %s886_s17, 1 }
  0x33   : > { %s555_s11 = sshll.u32 %s981_s28, 7  ;;  %s569_s18 = sshll.u32 %s882_s16, 11 }
  0x34   : > { %p1030_p7 = pnand %p1203_p2, %p1202_p1  ;;  %s1039_s22 = scalar_lea.hbm %s1192_s1, %s569_s18 }
  0x35   : > { %s189_s23 = scalar_lea.vmem [#allocation5], %s555_s11  ;;  %s186_s6 = scalar_lea.sflag [#allocation6], %s981_s28 }
  0x36   : > { %s196_s29 = sshll.u32 %s189_s23, 4  ;;  %s738_s8 = scalar_lea.hbm %s1039_s22, 2048  ;;  %s1041_s29 = int_to_ptr.vmem [resolvable:$true] %s196_s29 }
  0x37   : > { %p739_p9 = scmp.ne.s32.totalorder %s1039_s22, %s738_s8  ;;  %s743_s4 = scalar_lea.hbm %s1192_s1, 4096 }
  0x38   : > { %p744_p3 = scmp.lt.u32.totalorder %s1039_s22, %s1192_s1  ;;  %p745_p6 = scmp.lt.u32.totalorder %s743_s4, %s738_s8 }
  0x39   : > { %p741_p11 = pnand %p739_p9, %p710_p5  ;;  %p747_p10 = scmp.lt.u32.totalorder %s738_s8, %s1039_s22 }
  0x3a   : > { %p746_p4 = por %p745_p6, %p744_p3 }
  0x3b   : > { %p742_p13 = pneg %p741_p11 }
  0x3c   : > { %p748_p12 = por %p747_p10, %p746_p4 }
  0x3e   : > { %p749_p1 = pnand %p748_p12, %p742_p13 }
  0x40   : > { %752 = shalt.err (!%p749_p1)
}
  0x41   : > { %s753_s11 = scalar_lea.vmem %s1041_s29, 2048  ;;  %s889_s19 = smov [#allocation5]  }
  0x42   : > { %p754_p2 = scmp.ne.s32.totalorder %s1041_s29, %s753_s11  ;;  %s758_s21 = sshll.u32 %s889_s19, 4  ;;  %s759_s21 = int_to_ptr.vmem [resolvable:$false] %s758_s21 }
  0x43   : > { %s760_s23 = scalar_lea.vmem %s759_s21, 4096  ;;  %p761_p8 = scmp.lt.s32.totalorder %s1041_s29, %s759_s21 }
  0x44   : > { %p756_p9 = pnand %p754_p2, %p710_p5  ;;  %p762_p3 = scmp.lt.s32.totalorder %s760_s23, %s753_s11 }
  0x46   : > { %p757_p11 = pneg %p756_p9  ;;  %p763_p6 = por %p762_p3, %p761_p8 }
  0x48   : > { %p764_p4 = pnand %p763_p6, %p757_p11 }
  0x4a   : > { %767 = shalt.err (!%p764_p4)
}
  0x4b   : > { %s890_s8 = smov 128   ;;  %s891_s10 = smov 8  }
  0x4c   : > { %642 = dma.hbm_to_vmem [thread:$0]  (!%p994_p0), %s1039_s22, 2048, %s1041_s29, %s186_s6, %s890_s8, %s890_s8, %s891_s10  }
  0x4d   : > { %208 = sbr.rel (%p1030_p7) target bundleno = 908 (0x38c), region = 28  ;;  %s1072_s30 = sand.u32 (!%p1030_p7), 1, %s870_s13  }
  0x4e   : > { %s1075_s4 = sshll.u32 (!%p1030_p7), %s1072_s30, 3  ;;  %s211_s5 = scalar_lea.sflag (!%p1030_p7), [#allocation3], %s1072_s30 }
  0x4f   : > { %s214_s18 = scalar_lea.vmem (!%p1030_p7), [#allocation2], %s1075_s4  ;;  %p1205_p8 = scmp.ne.s32.totalorder (!%p1030_p7), %s1198_s24, 0 }
  0x54   : > { %849 = dma.done.wait (%p1205_p8), %s211_s5, 128  }
  0x55   : > { %851 = vsyncadd (%p1205_p8), %s211_s5, 4294967168  ;;  %s560_s28 = sshll.u32 %s1072_s30, 7  ;;  %s220_s9 = scalar_lea.sflag [#allocation6], %s1072_s30 }
  0x56   : > { %s1085_s7 = scalar_lea.vmem [#allocation5], %s560_s28 }
  0x57   : > { %853 = dma.done.wait (%p1205_p8), %s220_s9, 2048  }
  0x58   : > { %855 = vsyncadd (%p1205_p8), %s220_s9, 4294965248  ;;  %v892_v0 = vmov 0.0   ;;  %vm893_vm0 = vmmov 0   ;;  %v259_v1 = vld [vmem:[%s1085_s7] sm:$0xff]  ;;  %v260_v2 = vld [vmem:[%s1085_s7 + $0x8] sm:$0xff]  ;;  %v323_v27 = vlaneseq  ;;  %s255_s24 = scalar_lea.vmem [#allocation8], %s1075_s4 }
  0x59   : > { %588 = vmatprep.subr.bf16.mxu0 %v892_v0  ;;  %604 = vmatprep.mubr.msk.bf16.mxu0 %vm893_vm0, %v892_v0  ;;  %v275_v3 = vpack.c.bf16 %v260_v2, %v259_v1  ;;  %v261_v4 = vld [vmem:[%s1085_s7 + $0x10] sm:$0xff]  ;;  %v262_v5 = vld [vmem:[%s1085_s7 + $0x18] sm:$0xff]  ;;  %v263_v7 = vld [vmem:[%s1085_s7 + $0x20] sm:$0xff]  ;;  %s565_s22 = sshll.u32 %s878_s15, 7  ;;  %s413_s19 = sshll.u32 %s255_s24, 4  ;;  %s414_s19 = int_to_ptr.vmem [resolvable:$true] %s413_s19 }
  0x5a   : > { %608 = vmatprep.subr.bf16.mxu1 %v892_v0  ;;  %624 = vmatprep.mubr.msk.bf16.mxu1 %vm893_vm0, %v892_v0  ;;  %v276_v6 = vpack.c.bf16 %v262_v5, %v261_v4  ;;  %v264_v8 = vld [vmem:[%s1085_s7 + $0x28] sm:$0xff]  ;;  %v265_v10 = vld [vmem:[%s1085_s7 + $0x30] sm:$0xff]  ;;  %v266_v11 = vld [vmem:[%s1085_s7 + $0x38] sm:$0xff]  ;;  %v324_v28 = vand.u32 127, %v323_v27  ;;  %s1116_s11 = scalar_lea.hbm %s1194_s3, %s565_s22  ;;  %s385_s21 = scalar_lea.sflag [#allocation9], %s1072_s30 }
  0x5b   : > { %589 = vmatpush3.bf16.xpose.msra.mxu0 %v275_v3  ;;  %609 = vmatpush3.bf16.msra.mxu1 %v275_v3  ;;  %v277_v9 = vpack.c.bf16 %v264_v8, %v263_v7  ;;  %v278_v12 = vpack.c.bf16 %v266_v11, %v265_v10  ;;  %v267_v13 = vld [vmem:[%s1085_s7 + $0x40] sm:$0xff]  ;;  %v268_v14 = vld [vmem:[%s1085_s7 + $0x48] sm:$0xff]  ;;  %v269_v16 = vld [vmem:[%s1085_s7 + $0x50] sm:$0xff]  ;;  %s768_s23 = scalar_lea.vmem %s414_s19, 128  ;;  %p1206_p5 = scmp.ne.s32.totalorder %s1199_s25, 0 }
  0x5c   : > { %590 = vmatprep.subr.bf16.mxu0 %v892_v0  ;;  %610 = vmatprep.subr.bf16.mxu1 %v892_v0  ;;  %v279_v15 = vpack.c.bf16 %v268_v14, %v267_v13  ;;  %v270_v17 = vld [vmem:[%s1085_s7 + $0x58] sm:$0xff]  ;;  %v271_v19 = vld [vmem:[%s1085_s7 + $0x60] sm:$0xff]  ;;  %v272_v20 = vld [vmem:[%s1085_s7 + $0x68] sm:$0xff]  ;;  %vm325_vm1 = vcmp.lt.s32.totalorder %v324_v28, 8  ;;  %p769_p0 = scmp.ne.s32.totalorder %s414_s19, %s768_s23  ;;  %s894_s8 = smov [#allocation8]  }
  0x5d   : > { %v280_v18 = vpack.c.bf16 %v270_v17, %v269_v16  ;;  %v281_v21 = vpack.c.bf16 %v272_v20, %v271_v19  ;;  %v273_v22 = vld [vmem:[%s1085_s7 + $0x70] sm:$0xff]  ;;  %v274_v23 = vld [vmem:[%s1085_s7 + $0x78] sm:$0xff]  ;;  %s772_s10 = sshll.u32 %s894_s8, 4  ;;  %s773_s10 = int_to_ptr.vmem [resolvable:$false] %s772_s10 }
  0x5e   : > { %v282_v24 = vpack.c.bf16 %v274_v23, %v273_v22  ;;  %v257_v25 = vld [vmem:[%s214_s18] sm:$0xff]  ;;  %p770_p7 = pnand %p769_p0, %p1206_p5  ;;  %s774_s5 = scalar_lea.vmem %s773_s10, 256 }
  0x5f   : > { %611 = vmatpush3.bf16.msra.mxu1 %v276_v6  ;;  %v258_v26 = vpack.c.bf16 %v257_v25, %v257_v25  ;;  %p775_p10 = scmp.lt.s32.totalorder %s414_s19, %s773_s10  ;;  %p776_p12 = scmp.lt.s32.totalorder %s774_s5, %s768_s23 }
  0x60   : > { %612 = vmatprep.subr.bf16.mxu1 %v892_v0  ;;  %p771_p13 = pneg %p770_p7 }
  0x61   : > { %p777_p1 = por %p776_p12, %p775_p10 }
  0x63   : > { %591 = vmatpush3.bf16.xpose.msra.mxu0 %v276_v6  ;;  %613 = vmatpush3.bf16.msra.mxu1 %v277_v9  ;;  %p778_p2 = pnand %p777_p1, %p771_p13 }
  0x64   : > { %592 = vmatprep.subr.bf16.mxu0 %v892_v0  ;;  %614 = vmatprep.subr.bf16.mxu1 %v892_v0 }
  0x67   : > { %615 = vmatpush3.bf16.msra.mxu1 %v278_v12 }
  0x68   : > { %616 = vmatprep.subr.bf16.mxu1 %v892_v0 }
  0x6b   : > { %593 = vmatpush3.bf16.xpose.msra.mxu0 %v277_v9  ;;  %617 = vmatpush3.bf16.msra.mxu1 %v279_v15 }
  0x6c   : > { %594 = vmatprep.subr.bf16.mxu0 %v892_v0  ;;  %618 = vmatprep.subr.bf16.mxu1 %v892_v0 }
  0x6f   : > { %619 = vmatpush3.bf16.msra.mxu1 %v280_v18 }
  0x70   : > { %620 = vmatprep.subr.bf16.mxu1 %v892_v0 }
  0x73   : > { %595 = vmatpush3.bf16.xpose.msra.mxu0 %v278_v12  ;;  %621 = vmatpush3.bf16.msra.mxu1 %v281_v21 }
  0x74   : > { %596 = vmatprep.subr.bf16.mxu0 %v892_v0  ;;  %622 = vmatprep.subr.bf16.mxu1 %v892_v0 }
  0x77   : > { %623 = vmatpush3.bf16.msra.mxu1 %v282_v24 }
  0x7b   : > { %597 = vmatpush3.bf16.xpose.msra.mxu0 %v279_v15 }
  0x7c   : > { %598 = vmatprep.subr.bf16.mxu0 %v892_v0 }
  0x83   : > { %599 = vmatpush3.bf16.xpose.msra.mxu0 %v280_v18 }
  0x84   : > { %600 = vmatprep.subr.bf16.mxu0 %v892_v0 }
  0x8b   : > { %601 = vmatpush3.bf16.xpose.msra.mxu0 %v281_v21 }
  0x8c   : > { %602 = vmatprep.subr.bf16.mxu0 %v892_v0 }
  0x93   : > { %603 = vmatpush3.bf16.xpose.msra.mxu0 %v282_v24 }
  0x9a   : > { %605 = vmatmul.mubr.bf16.vlgmr.msra.gmra.mrb[0].mxu0 %v258_v26 }
 0x16d   : > { %v317_v29 = vpop.f32.mrb[0].mxu0 }
 0x16e   : > { %v606_v30 = vpop.f32.mrb[1].mxu0  ;;  %v326_v31 = vsel %vm325_vm1, %v317_v29, -1e+30 }
 0x16f   : > { %327 = vmax.xlane.f32.xlu0 %v326_v31  ;;  %v320_v32 = vpop.f32.mrb[2].mxu0 }
 0x170   : > { %v607_v33 = vpop.f32.mrb[3].mxu0 }
 0x1fc   : > { %v328_v34 = vpop.xlane.xlu0 %327 }
 0x1fd   : > { %v329_v35 = vsub.f32 %v326_v31, %v328_v34 }
 0x1ff   : > { %v330_v36 = vmul.f32 1.442695, %v329_v35 }
 0x201   : > { %704 = vpow2.f32 %v330_v36 }
 0x20b   : > { %v705_v37 = vpop.eup %704 }
 0x20c   : > { %332 = vadd.xlane.f32.xlu0 %v705_v37 }
 0x299   : > { %v333_v38 = vpop.xlane.xlu0 %332 }
 0x29a   : > { %706 = vrcp.f32 %v333_v38 }
 0x2a4   : > { %v707_v39 = vpop.eup %706 }
 0x2a5   : > { %v335_v40 = vmul.f32 %v707_v39, %v705_v37 }
 0x2a7   : > { %v337_v41 = vpack.c.bf16 %v335_v40, %v335_v40  ;;  %336 = vst [vmem:[%s255_s24] sm:$0xff] %v335_v40 }
 0x2a9   : > { %625 = vmatmul.mubr.bf16.vlgmr.msra.gmra.mrb[0].mxu1 %v337_v41 }
 0x2aa   : > { %781 = shalt.err (!%p778_p2)
}
 0x2ab   : > { %s782_s18 = scalar_lea.hbm %s1116_s11, 128  ;;  %s786_s7 = scalar_lea.hbm %s1194_s3, 256 }
 0x2ac   : > { %p783_p9 = scmp.ne.s32.totalorder %s1116_s11, %s782_s18  ;;  %p787_p6 = scmp.lt.u32.totalorder %s1116_s11, %s1194_s3 }
 0x2ad   : > { %p788_p4 = scmp.lt.u32.totalorder %s786_s7, %s782_s18  ;;  %p790_p0 = scmp.lt.u32.totalorder %s782_s18, %s1116_s11 }
 0x2ae   : > { %p784_p11 = pnand %p783_p9, %p1206_p5 }
 0x2af   : > { %p789_p8 = por %p788_p4, %p787_p6 }
 0x2b0   : > { %p785_p3 = pneg %p784_p11 }
 0x2b1   : > { %p791_p7 = por %p790_p0, %p789_p8 }
 0x2b3   : > { %p792_p13 = pnand %p791_p7, %p785_p3 }
 0x2b5   : > { %795 = shalt.err (!%p792_p13)
}
 0x2b6   : > { %633 = dma.vmem_to_hbm [thread:$0]  (%p1206_p5), %s414_s19, 128, %s1116_s11, %s385_s21  }
 0x2b7   : > { %s248_s6 = scalar_lea.vmem [#allocation7], %s1075_s4  ;;  %s1144_s5 = scalar_lea.hbm %s1193_s2, %s565_s22 }
 0x2b8   : > { %s399_s23 = sshll.u32 %s248_s6, 4  ;;  %s380_s18 = scalar_lea.sflag [#allocation4], %s1072_s30  ;;  %s1137_s23 = int_to_ptr.vmem [resolvable:$true] %s399_s23 }
 0x2b9   : > { %s796_s28 = scalar_lea.vmem %s1137_s23, 128  ;;  %s895_s4 = smov [#allocation7]  }
 0x2ba   : > { %p797_p10 = scmp.ne.s32.totalorder %s1137_s23, %s796_s28  ;;  %s800_s15 = sshll.u32 %s895_s4, 4  ;;  %s801_s15 = int_to_ptr.vmem [resolvable:$false] %s800_s15 }
 0x2bb   : > { %s802_s11 = scalar_lea.vmem %s801_s15, 256  ;;  %p803_p2 = scmp.lt.s32.totalorder %s1137_s23, %s801_s15 }
 0x2bc   : > { %p798_p12 = pnand %p797_p10, %p1206_p5  ;;  %p804_p9 = scmp.lt.s32.totalorder %s802_s11, %s796_s28 }
 0x2be   : > { %p799_p1 = pneg %p798_p12  ;;  %p805_p11 = por %p804_p9, %p803_p2 }
 0x2c0   : > { %p806_p3 = pnand %p805_p11, %p799_p1 }
 0x37c   : > { %v372_v42 = vpop.f32.mrb[0].mxu1 }
 0x37d   : > { %378 = vst [vmem:[%s248_s6] sm:$0xff] %v372_v42  ;;  %v626_v43 = vpop.f32.mrb[1].mxu1 }
 0x37e   : > { %v375_v44 = vpop.f32.mrb[2].mxu1 }
 0x37f   : > { %809 = shalt.err (!%p806_p3)
}
 0x380   : > { %s810_s30 = scalar_lea.hbm %s1144_s5, 128  ;;  %s814_s21 = scalar_lea.hbm %s1193_s2, 256 }
 0x381   : > { %p811_p6 = scmp.ne.s32.totalorder %s1144_s5, %s810_s30  ;;  %p815_p0 = scmp.lt.u32.totalorder %s1144_s5, %s1193_s2 }
 0x382   : > { %p816_p7 = scmp.lt.u32.totalorder %s814_s21, %s810_s30  ;;  %p818_p10 = scmp.lt.u32.totalorder %s810_s30, %s1144_s5 }
 0x383   : > { %p812_p4 = pnand %p811_p6, %p1206_p5 }
 0x384   : > { %p817_p13 = por %p816_p7, %p815_p0 }
 0x385   : > { %p813_p8 = pneg %p812_p4 }
 0x386   : > { %p819_p12 = por %p818_p10, %p817_p13 }
 0x388   : > { %p820_p1 = pnand %p819_p12, %p813_p8 }
 0x38a   : > { %823 = shalt.err (!%p820_p1)
}
 0x38b   : > { %632 = dma.vmem_to_hbm [thread:$0]  (%p1206_p5), %s1137_s23, 128, %s1144_s5, %s380_s18   ;;  %v627_v45 = vpop.f32.mrb[3].mxu1 }
 0x38c PF: > { %s425_s24 = sand.u32 1, %s866_s12   ;;  %p1207_p2 = scmp.ne.s32.totalorder %s1200_s27, 0 }
 0x38d   : > { %p1208_p9 = scmp.ge.s32.totalorder %s886_s17, 2  ;;  %s426_s29 = scalar_lea.sflag [#allocation4], %s425_s24 }
 0x38f   : > { %p644_p11 = pnand %p1208_p9, %p1207_p2 }
 0x391   : > { %857 = dma.done.wait (!%p644_p11), %s426_s29, 128  }
 0x392   : > { %859 = vsyncadd (!%p644_p11), %s426_s29, 4294967168  ;;  %s435_s6 = scalar_lea.sflag [#allocation9], %s425_s24 }
 0x393   : > { %861 = dma.done.wait (!%p644_p11), %s435_s6, 128  }
 0x394   : > { %863 = vsyncadd (!%p644_p11), %s435_s6, 4294967168  ;;  %s26_s17 = sadd.s32 1, %s886_s17   ;;  %s1209_s12 = smov %s870_s13 }
 0x395   : > { %p23_p3 = scmp.ge.s32.totalorder %s26_s17, 4   ;;  %s1210_s13 = smov %s874_s14 }
 0x396   : > { %s1211_s14 = smov %s972_s26  ;;  %s1212_s15 = smov %s882_s16 }
 0x397   : > { %s1213_s16 = smov %s1215_s20  ;;  %25 = sbr.rel (!%p23_p3) target bundleno = 10 (0xa), region = 103 }
 0x39e   :  { %440 = vsyncpa [#allocation3], 1 }
 0x39f   :  { %442 = vsyncpa [#allocation3 + $0x1], 1 }
 0x3a0   :  { %443 = vsyncpa [#allocation6], 1 }
 0x3a1   :  { %445 = vsyncpa [#allocation6 + $0x1], 1 }
 0x3a2   :  { %446 = vsyncpa [#allocation4], 1 }
 0x3a3   :  { %448 = vsyncpa [#allocation4 + $0x1], 1 }
 0x3a4   :  { %449 = vsyncpa [#allocation9], 1 }
 0x3a5   :  { %451 = vsyncpa [#allocation9 + $0x1], 1 }

</bundles_post_ra>
